<compile_context>
chip_gen: v5e
topology: v5e:2x2
jax: 0.10.0
libtpu: 0.0.40
codegen_flags: <defaults>
</compile_context>

<pallas_src>
import functools

import jax
import jax.numpy as jnp
from jax import lax
from jax.experimental import pallas as pl
from jax.experimental.pallas import tpu as pltpu


# ------------------------------ Pallas kernel -------------------------------
def _conv_relu_kernel(x_ref, w_ref, b_ref, o_ref, *, k, stride, band_h, w_out, cin):
    """One row-band of fused (pre-padded) conv + bias + ReLU.

    x_ref: (band_hq, s, Wq, s*Cin)  phase-split padded input band
           x_ref[hq, ry, wq, rx*Cin + c] == padded_input[row0 + hq*s + ry, wq*s + rx, c]
    w_ref: (k*k*Cin, Cout_p)        weights, rows ordered (dy, dx, ci), Cout padded to 128*
    b_ref: (1, Cout_p)              f32 bias (padded)
    o_ref: (band_h*w_out, Cout_p)   lane-dense output tile
    """
    xs = x_ref[...]                       # native dtype; no f32 force-cast
    m = band_h * w_out

    cols = []
    if stride == 1:
        # Hoist the dx shift: k sublane-shifted slabs, reused across all dy.
        slabs = []
        for dx in range(k):
            slab = xs[:, 0, dx:dx + w_out, :]                  # (band_hq, w_out, Cin)
            slabs.append(slab.reshape(slab.shape[0] * w_out, cin))
        for dy in range(k):
            base = dy * w_out
            for dx in range(k):
                cols.append(slabs[dx][base:base + m, :])
    else:
        # Phase-split layout -> every tap is a contiguous unit-stride slice.
        for dy in range(k):
            qy, ry = divmod(dy, stride)
            for dx in range(k):
                qx, rx = divmod(dx, stride)
                win = xs[qy:qy + band_h, ry, qx:qx + w_out, rx * cin:(rx + 1) * cin]
                cols.append(win.reshape(m, cin))

    # im2col LHS (m, k*k*Cin) -> single MXU matmul (one launch, deep contraction).
    patches = jnp.concatenate(cols, axis=-1)
    acc = jnp.dot(patches, w_ref[...], preferred_element_type=jnp.float32)
    y = jnp.maximum(acc + b_ref[...].astype(jnp.float32), 0.0)
    o_ref[...] = y.astype(o_ref.dtype)


# --------------------------------- wrapper ----------------------------------
def dense_conv2d1_forward(x_nchw, w_oihw, bias, *, stride=1):
    """out = ReLU(Conv2d(w, b, stride)(ReflectionPad2d(k//2)(x))).  NCHW in/out."""
    B, Cin, H, W = x_nchw.shape
    Cout, Cin_w, kh, kw = w_oihw.shape
    assert Cin_w == Cin and kh == kw, "square kernel, matching channels"
    k, s = kh, stride
    pad = k // 2
    assert pad < H and pad < W, "ReflectionPad2d requires pad < spatial dims"

    Hp, Wp = H + 2 * pad, W + 2 * pad
    h_out = (Hp - k) // s + 1
    w_out = (Wp - k) // s + 1
    dtype = x_nchw.dtype

    # NCHW -> NHWC (channels on lanes) + reflection padding (XLA glue).
    x_nhwc = jnp.transpose(x_nchw, (0, 2, 3, 1))
    xp = jnp.pad(x_nhwc, ((0, 0), (pad, pad), (pad, pad), (0, 0)), mode="reflect")

    # ---- row-band (+halo) and stride phase-split packing, wrapper-side -----
    band_h = max(1, min(h_out, max(1, 128 // max(1, w_out))))   # ~128 output rows/step
    n_bands = -(-h_out // band_h)
    band_hq = band_h - 1 + (-(-k // s))      # phase-major rows per band (incl. halo)
    Wq = w_out + (k - 1) // s

    row = (jnp.arange(n_bands)[:, None, None] * (band_h * s)
           + jnp.arange(band_hq)[None, :, None] * s
           + jnp.arange(s)[None, None, :])                       # (n_bands, band_hq, s)
    row = jnp.minimum(row, Hp - 1)                               # clamp partial last band
    col = jnp.arange(Wq)[:, None] * s + jnp.arange(s)[None, :]   # (Wq, s)
    col = jnp.minimum(col, Wp - 1)

    # xb[b, band, hq, ry, wq, rx*Cin + c] = xp[b, row[band,hq,ry], col[wq,rx], c]
    xb = xp[:, row][:, :, :, :, col]                             # (B,nb,band_hq,s,Wq,s,Cin)
    xb = xb.reshape(B, n_bands, band_hq, s, Wq, s * Cin)         # contiguous band DMAs

    # Weights OIHW -> (k*k*Cin, Cout_p): rows ordered (dy, dx, ci); Cout padded
    # to a multiple of 128 so the output tile/stores are lane-dense.
    kkc = k * k * Cin
    Cout_p = -(-Cout // 128) * 128
    w2d = jnp.transpose(w_oihw, (2, 3, 1, 0)).reshape(kkc, Cout)
    w2d = jnp.pad(w2d, ((0, 0), (0, Cout_p - Cout))).astype(dtype)
    b2d = jnp.pad(bias, (0, Cout_p - Cout)).reshape(1, Cout_p).astype(jnp.float32)

    m = band_h * w_out
    kernel = functools.partial(_conv_relu_kernel, k=k, stride=s,
                               band_h=band_h, w_out=w_out, cin=Cin)

    itemsize = jnp.dtype(dtype).itemsize
    cost = pl.CostEstimate(
        flops=int(2 * B * n_bands * m * kkc * Cout_p),
        transcendentals=0,
        bytes_accessed=int(xb.size * itemsize + w2d.size * itemsize
                           + b2d.size * 4 + B * n_bands * m * Cout_p * itemsize))

    y = pl.pallas_call(
        kernel,
        out_shape=jax.ShapeDtypeStruct((B, n_bands, m, Cout_p), dtype),
        grid_spec=pltpu.PrefetchScalarGridSpec(
            num_scalar_prefetch=0,
            grid=(B, n_bands),
            in_specs=[
                pl.BlockSpec((None, None, band_hq, s, Wq, s * Cin),
                             lambda b, r: (b, r, 0, 0, 0, 0)),
                pl.BlockSpec((kkc, Cout_p), lambda b, r: (0, 0)),
                pl.BlockSpec((1, Cout_p), lambda b, r: (0, 0)),
            ],
            out_specs=pl.BlockSpec((None, None, m, Cout_p),
                                   lambda b, r: (b, r, 0, 0)),
        ),
        compiler_params=pltpu.CompilerParams(
            dimension_semantics=("parallel", "parallel"),
            vmem_limit_bytes=48 * 1024 * 1024),
        cost_estimate=cost,
    )(xb, w2d, b2d)

    # (B, n_bands, band_h*w_out, Cout_p) -> NCHW, dropping row/channel padding.
    y = y.reshape(B, n_bands * band_h, w_out, Cout_p)[:, :h_out, :, :Cout]
    return jnp.transpose(y, (0, 3, 1, 2))


# ----------------------------------- main ------------------------------------
if __name__ == "__main__":
    root = jax.random.PRNGKey(0)
    k_x, k_w, k_b = jax.random.split(root, 3)

    B, Cin, H, W = 2, 4, 16, 16
    Cout, K = 8, 3

    x = jax.random.normal(k_x, (B, Cin, H, W), jnp.float32)
    fan_in = float(Cin * K * K)
    bound = (1.0 / fan_in) ** 0.5
    w = jax.random.uniform(k_w, (Cout, Cin, K, K), jnp.float32, -bound, bound)
    b = jax.random.uniform(k_b, (Cout,), jnp.float32, -bound, bound)

    def ref_forward(x, w, b, stride):
        pad = K // 2
        xp_ref = jnp.pad(x, ((0, 0), (0, 0), (pad, pad), (pad, pad)), mode="reflect")
        y_ref = lax.conv_general_dilated(
            xp_ref, w, (stride, stride), "VALID",
            dimension_numbers=("NCHW", "OIHW", "NCHW"))
        return jnp.maximum(y_ref + b.reshape(1, Cout, 1, 1), 0.0)

    # stride=1 (module default usage) and stride=2 (exercises the phase-split path).
    for stride in (1, 2):
        fwd = jax.jit(functools.partial(dense_conv2d1_forward, stride=stride))
        y = fwd(x, w, b)
        jax.block_until_ready(y)

        y_ref = ref_forward(x, w, b, stride)
        assert y.shape == y_ref.shape, (stride, y.shape, y_ref.shape)
        assert bool(jnp.all(jnp.isfinite(y)))
        err = float(jnp.max(jnp.abs(y - y_ref)))
        assert err < 1e-3, (stride, err)

    print("KERNEL_OK")
</pallas_src>

<mosaic_0001>
module attributes {stable_mosaic.version = 11 : i64} {
  func.func @_conv_relu_kernel(%arg0: i32, %arg1: i32, %arg2: memref<1x1x10x1x18x4xf32, #tpu.memory_space<vmem>>, %arg3: memref<36x128xf32, #tpu.memory_space<vmem>>, %arg4: memref<1x128xf32, #tpu.memory_space<vmem>>, %arg5: memref<1x1x128x128xf32, #tpu.memory_space<vmem>>) attributes {dimension_semantics = [#tpu.dimension_semantics<parallel>, #tpu.dimension_semantics<parallel>], iteration_bounds = array<i64: 2, 2>, scalar_prefetch = 0 : i64, scratch_operands = 0 : i64, tpu.core_type = #tpu.core_type<tc>, window_params = [{transform_indices = @transform_0, window_bounds = array<i64: 1, 1, 10, 1, 18, 4>}, {pipeline_mode = #tpu.pipeline_mode<synchronous>, transform_indices = @transform_1, window_bounds = array<i64: 36, 128>}, {pipeline_mode = #tpu.pipeline_mode<synchronous>, transform_indices = @transform_2, window_bounds = array<i64: 1, 128>}, {transform_indices = @transform_3, window_bounds = array<i64: 1, 1, 128, 128>}]} {
    %c0 = arith.constant 0 : index
    %c0_0 = arith.constant 0 : index
    %c0_1 = arith.constant 0 : index
    %c0_2 = arith.constant 0 : index
    %c0_3 = arith.constant 0 : index
    %c0_4 = arith.constant 0 : index
    %0 = vector.load %arg2[%c0, %c0_0, %c0_1, %c0_2, %c0_3, %c0_4] : memref<1x1x10x1x18x4xf32, #tpu.memory_space<vmem>>, vector<1x1x10x1x18x4xf32>
    %1 = vector.shape_cast %0 : vector<1x1x10x1x18x4xf32> to vector<10x1x18x4xf32>
    %2 = vector.extract_strided_slice %1 {offsets = [0, 0, 0, 0], sizes = [10, 1, 16, 4], strides = [1, 1, 1, 1]} : vector<10x1x18x4xf32> to vector<10x1x16x4xf32>
    %3 = vector.shape_cast %2 : vector<10x1x16x4xf32> to vector<10x16x4xf32>
    %4 = vector.shape_cast %3 : vector<10x16x4xf32> to vector<160x4xf32>
    %5 = vector.extract_strided_slice %1 {offsets = [0, 0, 1, 0], sizes = [10, 1, 16, 4], strides = [1, 1, 1, 1]} : vector<10x1x18x4xf32> to vector<10x1x16x4xf32>
    %6 = vector.shape_cast %5 : vector<10x1x16x4xf32> to vector<10x16x4xf32>
    %7 = vector.shape_cast %6 : vector<10x16x4xf32> to vector<160x4xf32>
    %8 = vector.extract_strided_slice %1 {offsets = [0, 0, 2, 0], sizes = [10, 1, 16, 4], strides = [1, 1, 1, 1]} : vector<10x1x18x4xf32> to vector<10x1x16x4xf32>
    %9 = vector.shape_cast %8 : vector<10x1x16x4xf32> to vector<10x16x4xf32>
    %10 = vector.shape_cast %9 : vector<10x16x4xf32> to vector<160x4xf32>
    %11 = vector.extract_strided_slice %4 {offsets = [0, 0], sizes = [128, 4], strides = [1, 1]} : vector<160x4xf32> to vector<128x4xf32>
    %12 = vector.extract_strided_slice %7 {offsets = [0, 0], sizes = [128, 4], strides = [1, 1]} : vector<160x4xf32> to vector<128x4xf32>
    %13 = vector.extract_strided_slice %10 {offsets = [0, 0], sizes = [128, 4], strides = [1, 1]} : vector<160x4xf32> to vector<128x4xf32>
    %14 = vector.extract_strided_slice %4 {offsets = [16, 0], sizes = [128, 4], strides = [1, 1]} : vector<160x4xf32> to vector<128x4xf32>
    %15 = vector.extract_strided_slice %7 {offsets = [16, 0], sizes = [128, 4], strides = [1, 1]} : vector<160x4xf32> to vector<128x4xf32>
    %16 = vector.extract_strided_slice %10 {offsets = [16, 0], sizes = [128, 4], strides = [1, 1]} : vector<160x4xf32> to vector<128x4xf32>
    %17 = vector.extract_strided_slice %4 {offsets = [32, 0], sizes = [128, 4], strides = [1, 1]} : vector<160x4xf32> to vector<128x4xf32>
    %18 = vector.extract_strided_slice %7 {offsets = [32, 0], sizes = [128, 4], strides = [1, 1]} : vector<160x4xf32> to vector<128x4xf32>
    %19 = vector.extract_strided_slice %10 {offsets = [32, 0], sizes = [128, 4], strides = [1, 1]} : vector<160x4xf32> to vector<128x4xf32>
    %20 = tpu.concatenate %11, %12, %13, %14, %15, %16, %17, %18, %19 in 1 : vector<128x4xf32>, vector<128x4xf32>, vector<128x4xf32>, vector<128x4xf32>, vector<128x4xf32>, vector<128x4xf32>, vector<128x4xf32>, vector<128x4xf32>, vector<128x4xf32> -> vector<128x36xf32>
    %c0_5 = arith.constant 0 : index
    %c0_6 = arith.constant 0 : index
    %21 = vector.load %arg3[%c0_5, %c0_6] : memref<36x128xf32, #tpu.memory_space<vmem>>, vector<36x128xf32>
    %cst = arith.constant dense<0.000000e+00> : vector<128x128xf32>
    %22 = tpu.matmul %20, %21, %cst {dimension_numbers = #tpu.dot_dimension_numbers<[1], [0], [0], [1], [0, 0, 1, 1], [], []>} : vector<128x36xf32>, vector<36x128xf32>, vector<128x128xf32> -> vector<128x128xf32>
    %c0_7 = arith.constant 0 : index
    %c0_8 = arith.constant 0 : index
    %23 = vector.load %arg4[%c0_7, %c0_8] : memref<1x128xf32, #tpu.memory_space<vmem>>, vector<1x128xf32>
    %24 = vector.broadcast %23 : vector<1x128xf32> to vector<128x128xf32>
    %25 = arith.addf %22, %24 : vector<128x128xf32>
    %cst_9 = arith.constant 0.000000e+00 : f32
    %26 = vector.broadcast %cst_9 : f32 to vector<128x128xf32>
    %27 = arith.maximumf %25, %26 : vector<128x128xf32>
    %c0_10 = arith.constant 0 : index
    %c0_11 = arith.constant 0 : index
    %c0_12 = arith.constant 0 : index
    %c0_13 = arith.constant 0 : index
    %28 = vector.load %arg5[%c0_10, %c0_11, %c0_12, %c0_13] : memref<1x1x128x128xf32, #tpu.memory_space<vmem>>, vector<1x1x128x128xf32>
    %29 = vector.shape_cast %28 : vector<1x1x128x128xf32> to vector<128x128xf32>
    %30 = vector.shape_cast %27 : vector<128x128xf32> to vector<1x1x128x128xf32>
    tpu.vector_store %arg5[%c0_10, %c0_11, %c0_12, %c0_13], %30 {strides = array<i32>} : memref<1x1x128x128xf32, #tpu.memory_space<vmem>>, vector<1x1x128x128xf32>,
    return
  }
  func.func @transform_0(%arg0: i32, %arg1: i32) -> (i32, i32, i32, i32, i32, i32) {
    %c0_i32 = arith.constant 0 : i32
    %c0_i32_0 = arith.constant 0 : i32
    %c0_i32_1 = arith.constant 0 : i32
    %c0_i32_2 = arith.constant 0 : i32
    %c0_i32_3 = arith.constant 0 : i32
    return %arg0, %arg1, %c0_i32, %c0_i32_0, %c0_i32_1, %c0_i32_2 : i32, i32, i32, i32, i32, i32
  }
  func.func @transform_1(%arg0: i32, %arg1: i32) -> (i32, i32) {
    %c0_i32 = arith.constant 0 : i32
    %c0_i32_0 = arith.constant 0 : i32
    %c0_i32_1 = arith.constant 0 : i32
    return %c0_i32, %c0_i32_0 : i32, i32
  }
  func.func @transform_2(%arg0: i32, %arg1: i32) -> (i32, i32) {
    %c0_i32 = arith.constant 0 : i32
    %c0_i32_0 = arith.constant 0 : i32
    %c0_i32_1 = arith.constant 0 : i32
    return %c0_i32, %c0_i32_0 : i32, i32
  }
  func.func @transform_3(%arg0: i32, %arg1: i32) -> (i32, i32, i32, i32) {
    %c0_i32 = arith.constant 0 : i32
    %c0_i32_0 = arith.constant 0 : i32
    %c0_i32_1 = arith.constant 0 : i32
    return %arg0, %arg1, %c0_i32, %c0_i32_0 : i32, i32, i32, i32
  }
}

</mosaic_0001>

<bundles_post_ra>
// kernel: dense_conv2d1_forward.1
= control target key start
LH: loop header
LB: loop body
LE: loop exit
PB: predicated region body
PF: predicated region fallthrough
CT: control target
= control target key end

     0   :  { %s1305_s12 = smov 0   ;;  %s1307_s13 = smov 0   ;;  %s2176_s0 = inlined_call_operand.vmem [shape: f32[2,2,10,1,18,4], index: 0, kind: input, shape index: {}]   ;;  %s2177_s1 = inlined_call_operand.vmem [shape: f32[36,128], index: 1, kind: input, shape index: {}]   ;;  %s2178_s2 = inlined_call_operand.vmem [shape: f32[1,128], index: 2, kind: input, shape index: {}]   ;;  %s2179_s3 = inlined_call_operand.vmem [shape: f32[2,2,128,128], index: 3, kind: output, shape index: {}]  }
   0x1   :  { %s1309_s14 = smov 0   ;;  %s1311_s15 = smov 0  }
   0x2   :  { %s1313_s16 = smov 0  }
   0x3 LB: > { %s22_s17 = sadd.s32 1, %s1267_s14  ;;  %s25_s18 = sadd.s32 1, %s1271_s15  ;;  %s1275_s16 = sphi %s1313_s16, %s13_s16   ;;  %s1271_s15 = sphi %s1311_s15, %s2192_s15   ;;  %s1267_s14 = sphi %s1309_s14, %s2191_s14   ;;  %s1263_s13 = sphi %s1307_s13, %s2190_s13   ;;  %s1259_s12 = sphi %s1305_s12, %s2189_s12  }
   0x4   : > { %p23_p0 = scmp.ge.s32.totalorder %s22_s17, 2  ;;  %p1147_p1 = scmp.ge.s32.totalorder %s1275_s16, 1 }
   0x5   : > { %p157_p2 = scmp.lt.s32.totalorder %s1275_s16, 5 }
   0x6   : > { %s2194_s17 = smov (%p23_p0, %s22_s17), 0  ;;  %s2196_s18 = smov (!%p23_p0, %s25_s18), %s1271_s15 }
   0x7   : > { %p158_p3 = pnand %p1147_p1, %p157_p2  ;;  %p27_p4 = scmp.ge.s32.totalorder %s2196_s18, 2 }
   0x9   : > { %s2198_s18 = smov (%p27_p4, %s2196_s18), 0  ;;  %161 = sbr.rel (%p158_p3) target bundleno = 612 (0x264), region = 32 }
   0xe   : > { %p189_p5 = scmp.lt.s32.totalorder %s1263_s13, 1  ;;  %p191_p6 = scmp.lt.s32.totalorder %s1259_s12, 1  ;;  %vm267_vm0 = vcmask 1046528   ;;  %vm318_vm1 = vcmask 1045504   ;;  %vm770_vm2 = vcmask 64512   ;;  %vm753_vm3 = vcmask 31744  }
   0xf   : > { %s1277_s26 = smov 4   ;;  %s1278_s27 = smov 8   ;;  %vm787_vm4 = vcmask 97280   ;;  %vm804_vm5 = vcmask 130048   ;;  %vm947_vm6 = vcmask 1043456   ;;  %vm821_vm7 = vcmask 162816  }
  0x10   : > { %s2200_s13 = smov (!%p189_p5, %s1263_s13), 1  ;;  %s2202_s12 = smov (!%p191_p6, %s1259_s12), 1  ;;  %vm838_vm8 = vcmask 195584   ;;  %vm855_vm9 = vcmask 228352   ;;  %vm872_vm10 = vcmask 261120   ;;  %vm898_vm11 = vcmask 293888  }
  0x11   : > { %s1187_s19 = smul.u32 60, %s2200_s13  ;;  %s1279_s28 = smov 12  }
  0x12   : > { %s1186_s20 = smul.u32 30, %s2202_s12  ;;  %s1280_s29 = smov 16  }
  0x13   : > { %s1281_s30 = smov 20   ;;  %s1282_s4 = smov 28  }
  0x14   : > { %s195_s21 = sadd.s32 %s1187_s19, %s1186_s20  ;;  %s1283_s5 = smov 24  }
  0x15   : > { %s1148_s22 = sshll.u32 %s195_s21, 3  ;;  %s1284_s6 = smov 32  }
  0x16   : > { %s1344_s25 = scalar_lea.vmem %s2176_s0, %s1148_s22  ;;  %s1149_s24 = sshll.u32 %s2202_s12, 4 }
  0x17   : > { %v1347_v0 = vld [vmem:[%s1344_s25 + $0x30] sm:$0xff]  ;;  %v1350_v1 = vld [vmem:[%s1344_s25 + $0x38] sm:$0xff]  ;;  %v1358_v5 = vld [vmem:[%s1344_s25 + $0x20] sm:$0xff] }
  0x18   : > { %v1353_v2 = vld [vmem:[%s1344_s25 + $0x18] sm:$0xff]  ;;  %v278_v3 = vrot.slane %v1347_v0, 1  ;;  %v279_v4 = vrot.slane %v1350_v1, 1  ;;  %v1362_v7 = vld [vmem:[%s1344_s25] sm:$0xff]  ;;  %v1365_v8 = vld [vmem:[%s1344_s25 + $0x8] sm:$0xff]  ;;  %v274_v9 = vrot.slane %v1358_v5, 1 }
  0x19   : > { %v273_v6 = vrot.slane %v1353_v2, 1  ;;  %v268_v10 = vrot.slane %v1362_v7, 1  ;;  %v269_v11 = vrot.slane %v1365_v8, 1  ;;  %v1371_v12 = vld [vmem:[%s1344_s25 + $0x40] sm:$0x3]  ;;  %v1405_v25 = vld [vmem:[%s1344_s25 + $0x68] sm:$0xff] }
  0x1a   : > { %v1374_v13 = vsel %vm267_vm0, %v278_v3, %v279_v4  ;;  %v1377_v14 = vld [vmem:[%s1344_s25 + $0x28] sm:$0x3]  ;;  %v1380_v15 = vld [vmem:[%s1344_s25 + $0x10] sm:$0x3]  ;;  %v281_v18 = vrot.slane %v1371_v12, 1  ;;  %v1402_v24 = vld [vmem:[%s1344_s25 + $0x60] sm:$0xff] }
  0x1b   : > { %377 = vrot.lane.b32.xlu2 %v1374_v13, %s1277_s26  ;;  %v1385_v16 = vsel %vm267_vm0, %v273_v6, %v274_v9  ;;  %v270_v17 = vsel %vm267_vm0, %v268_v10, %v269_v11  ;;  %v276_v19 = vrot.slane %v1377_v14, 1  ;;  %v271_v20 = vrot.slane %v1380_v15, 1  ;;  %v1408_v26 = vld [vmem:[%s1344_s25 + $0x50] sm:$0xff]  ;;  %v1411_v27 = vld [vmem:[%s1344_s25 + $0x58] sm:$0x3]  ;;  %v1414_v28 = vld [vmem:[%s1344_s25 + $0x48] sm:$0xff] }
  0x1c   : > { %373 = vrot.lane.b32.xlu1 %v1385_v16, %s1277_s26  ;;  %369 = vrot.lane.b32.xlu0 %v270_v17, %s1277_s26  ;;  %v1395_v21 = vsel %vm267_vm0, %v279_v4, %v281_v18  ;;  %2183 = vst [vmem:[#allocation2_spill] sm:$0xff] %v1408_v26  ;;  %v288_v29 = vrot.slane %v1402_v24, 1  ;;  %v289_v30 = vrot.slane %v1405_v25, 1  ;;  %v284_v31 = vrot.slane %v1408_v26, 1  ;;  %v1436_v37 = vld [vmem:[%s1344_s25 + $0x80] sm:$0xff]  ;;  %v1442_v39 = vld [vmem:[%s1344_s25 + $0x78] sm:$0xff] }
  0x1d   : > { %v1398_v22 = vsel %vm267_vm0, %v274_v9, %v276_v19  ;;  %v272_v23 = vsel %vm267_vm0, %v269_v11, %v271_v20  ;;  %v286_v32 = vrot.slane %v1411_v27, 1  ;;  %v283_v33 = vrot.slane %v1414_v28, 1  ;;  %v1439_v38 = vld [vmem:[%s1344_s25 + $0x88] sm:$0x3]  ;;  %v1445_v40 = vld [vmem:[%s1344_s25 + $0x70] sm:$0x3] }
  0x1e   : > { %v1427_v34 = vsel %vm267_vm0, %v288_v29, %v289_v30  ;;  %v294_v41 = vrot.slane %v1436_v37, 1  ;;  %v296_v42 = vrot.slane %v1439_v38, 1  ;;  %v293_v43 = vrot.slane %v1442_v39, 1  ;;  %v1467_v48 = vld [vmem:[%s1344_s25 + $0xa8] sm:$0xff]  ;;  %v1470_v49 = vld [vmem:[%s1344_s25 + $0xb0] sm:$0xff]  ;;  %v1473_v50 = vld [vmem:[%s1344_s25 + $0x98] sm:$0xff] }
  0x1f   : > { %v1430_v35 = vsel %vm267_vm0, %v284_v31, %v286_v32  ;;  %v1433_v36 = vsel %vm267_vm0, %v283_v33, %v284_v31  ;;  %v291_v44 = vrot.slane %v1445_v40, 1  ;;  %v1476_v51 = vld [vmem:[%s1344_s25 + $0xa0] sm:$0x3]  ;;  %v1479_v52 = vld [vmem:[%s1344_s25 + $0x90] sm:$0xff]  ;;  %v303_v53 = vrot.slane %v1467_v48, 1 }
  0x20   : > { %2184 = vst [vmem:[#allocation3_spill] sm:$0xff] %v1430_v35  ;;  %v1458_v45 = vsel %vm267_vm0, %v294_v41, %v296_v42  ;;  %v1461_v46 = vsel %vm267_vm0, %v293_v43, %v294_v41  ;;  %v304_v54 = vrot.slane %v1470_v49, 1  ;;  %v299_v55 = vrot.slane %v1473_v50, 1  ;;  %v1502_v61 = vld [vmem:[%s1344_s25 + $0xb8] sm:$0x3] }
  0x21   : > { %2185 = vst [vmem:[#allocation4_spill] sm:$0xff] %v1458_v45  ;;  %v1464_v47 = vsel %vm267_vm0, %v289_v30, %v291_v44  ;;  %v301_v56 = vrot.slane %v1476_v51, 1  ;;  %v298_v57 = vrot.slane %v1479_v52, 1  ;;  %v320_v62 = vrot.slane %v1365_v8, 2 }
  0x22   : > { %v1493_v58 = vsel %vm267_vm0, %v303_v53, %v304_v54  ;;  %v322_v63 = vrot.slane %v1380_v15, 2  ;;  %v319_v3 = vrot.slane %v1362_v7, 2  ;;  %v306_v4 = vrot.slane %v1502_v61, 1 }
  0x23   : > { %379 = vrot.lane.b32.xlu2 %v1395_v21, %s1277_s26  ;;  %v1496_v59 = vsel %vm267_vm0, %v299_v55, %v301_v56  ;;  %v1499_v60 = vsel %vm267_vm0, %v298_v57, %v299_v55  ;;  %v329_v11 = vrot.slane %v1347_v0, 2  ;;  %v330_v15 = vrot.slane %v1350_v1, 2 }
  0x24   : > { %375 = vrot.lane.b32.xlu1 %v1398_v22, %s1277_s26  ;;  %371 = vrot.lane.b32.xlu0 %v272_v23, %s1277_s26  ;;  %v323_v6 = vsel %vm318_vm1, %v320_v62, %v322_v63  ;;  %v321_v9 = vsel %vm318_vm1, %v319_v3, %v320_v62  ;;  %v1517_v10 = vsel %vm267_vm0, %v304_v54, %v306_v4  ;;  %v325_v17 = vrot.slane %v1358_v5, 2 }
  0x25   : > { %v327_v18 = vrot.slane %v1377_v14, 2  ;;  %v324_v19 = vrot.slane %v1353_v2, 2  ;;  %v1529_v20 = vsel %vm318_vm1, %v329_v11, %v330_v15  ;;  %v335_v14 = vrot.slane %v1408_v26, 2 }
  0x26   : > { %v337_v30 = vrot.slane %v1411_v27, 2  ;;  %v334_v31 = vrot.slane %v1414_v28, 2  ;;  %v332_v32 = vrot.slane %v1371_v12, 2  ;;  %v344_v12 = vrot.slane %v1442_v39, 2 }
  0x27   : > { %v1532_v23 = vsel %vm318_vm1, %v325_v17, %v327_v18  ;;  %v1535_v29 = vsel %vm318_vm1, %v324_v19, %v325_v17  ;;  %v345_v27 = vrot.slane %v1436_v37, 2  ;;  %v340_v43 = vrot.slane %v1405_v25, 2 }
  0x28   : > { %v1548_v33 = vsel %vm318_vm1, %v335_v14, %v337_v30  ;;  %v1551_v41 = vsel %vm318_vm1, %v334_v31, %v335_v14  ;;  %v1554_v42 = vsel %vm318_vm1, %v330_v15, %v332_v32  ;;  %v342_v44 = vrot.slane %v1445_v40, 2  ;;  %v1634_v31 = vld [vmem:[%s1344_s25 + $0xc8] sm:$0xff]  ;;  %v1637_v32 = vld [vmem:[%s1344_s25 + $0xc0] sm:$0xff] }
  0x29   : > { %v339_v53 = vrot.slane %v1402_v24, 2  ;;  %v1568_v54 = vsel %vm318_vm1, %v344_v12, %v345_v27  ;;  %v350_v40 = vrot.slane %v1473_v50, 2  ;;  %v352_v57 = vrot.slane %v1476_v51, 2 }
  0x2a   : > { %v1571_v55 = vsel %vm318_vm1, %v340_v43, %v342_v44  ;;  %v349_v62 = vrot.slane %v1479_v52, 2  ;;  %v347_v63 = vrot.slane %v1439_v38, 2  ;;  %v355_v38 = vrot.slane %v1470_v49, 2 }
  0x2b   : > { %385 = vrot.lane.b32.xlu2 %v1427_v34, %s1277_s26  ;;  %v1574_v56 = vsel %vm318_vm1, %v339_v53, %v340_v43  ;;  %v1587_v3 = vsel %vm318_vm1, %v350_v40, %v352_v57  ;;  %v357_v51 = vrot.slane %v1502_v61, 2 }
  0x2c   : > { %383 = vrot.lane.b32.xlu1 %v1430_v35, %s1277_s26  ;;  %381 = vrot.lane.b32.xlu0 %v1433_v36, %s1277_s26  ;;  %v1590_v4 = vsel %vm318_vm1, %v349_v62, %v350_v40 }
  0x2d   : > { %v1605_v11 = vsel %vm318_vm1, %v355_v38, %v357_v51 }
  0x33   : > { %391 = vrot.lane.b32.xlu2 %v1458_v45, %s1277_s26 }
  0x34   : > { %389 = vrot.lane.b32.xlu1 %v1461_v46, %s1277_s26  ;;  %387 = vrot.lane.b32.xlu0 %v1464_v47, %s1277_s26 }
  0x3b   : > { %397 = vrot.lane.b32.xlu2 %v1493_v58, %s1277_s26 }
  0x3c   : > { %395 = vrot.lane.b32.xlu1 %v1496_v59, %s1277_s26  ;;  %393 = vrot.lane.b32.xlu0 %v1499_v60, %s1277_s26 }
  0x43   : > { %419 = vrot.lane.b32.xlu2 %v323_v6, %s1278_s27  ;;  %v1593_v6 = vsel %vm318_vm1, %v345_v27, %v347_v63 }
  0x44   : > { %417 = vrot.lane.b32.xlu1 %v321_v9, %s1278_s27  ;;  %399 = vrot.lane.b32.xlu0 %v1517_v10, %s1277_s26  ;;  %v354_v9 = vrot.slane %v1467_v48, 2 }
  0x46   : > { %v1608_v15 = vsel %vm318_vm1, %v354_v9, %v355_v38 }
  0x4b   : > { %425 = vrot.lane.b32.xlu2 %v1529_v20, %s1278_s27 }
  0x4c   : > { %423 = vrot.lane.b32.xlu1 %v1532_v23, %s1278_s27  ;;  %421 = vrot.lane.b32.xlu0 %v1535_v29, %s1278_s27 }
  0x53   : > { %431 = vrot.lane.b32.xlu2 %v1548_v33, %s1278_s27 }
  0x54   : > { %429 = vrot.lane.b32.xlu1 %v1551_v41, %s1278_s27  ;;  %427 = vrot.lane.b32.xlu0 %v1554_v42, %s1278_s27 }
  0x5b   : > { %437 = vrot.lane.b32.xlu2 %v1568_v54, %s1278_s27 }
  0x5c   : > { %435 = vrot.lane.b32.xlu1 %v1571_v55, %s1278_s27  ;;  %433 = vrot.lane.b32.xlu0 %v1574_v56, %s1278_s27 }
  0x63   : > { %443 = vrot.lane.b32.xlu2 %v1587_v3, %s1278_s27 }
  0x64   : > { %441 = vrot.lane.b32.xlu1 %v1590_v4, %s1278_s27  ;;  %439 = vrot.lane.b32.xlu0 %v1593_v6, %s1278_s27 }
  0x6b   : > { %465 = vrot.lane.b32.xlu2 %v1353_v2, %s1279_s28 }
  0x6c   : > { %447 = vrot.lane.b32.xlu1 %v1605_v11, %s1278_s27  ;;  %445 = vrot.lane.b32.xlu0 %v1608_v15, %s1278_s27 }
  0x73   : > { %471 = vrot.lane.b32.xlu2 %v1350_v1, %s1279_s28 }
  0x74   : > { %469 = vrot.lane.b32.xlu1 %v1347_v0, %s1279_s28  ;;  %467 = vrot.lane.b32.xlu0 %v1358_v5, %s1279_s28 }
  0x75   : > { %v378_v61 = vpop.permute.xlu2 %377 }
  0x7b   : > { %477 = vrot.lane.b32.xlu2 %v1402_v24, %s1279_s28 }
  0x7c   : > { %475 = vrot.lane.b32.xlu1 %v1408_v26, %s1279_s28  ;;  %473 = vrot.lane.b32.xlu0 %v1414_v28, %s1279_s28 }
  0x7d   : > { %v1621_v17 = vpop.permute.xlu2 %379 }
  0x83   : > { %483 = vrot.lane.b32.xlu2 %v1436_v37, %s1279_s28 }
  0x84   : > { %481 = vrot.lane.b32.xlu1 %v1442_v39, %s1279_s28  ;;  %479 = vrot.lane.b32.xlu0 %v1405_v25, %s1279_s28 }
  0x85   : > { %v1626_v18 = vpop.permute.xlu2 %385 }
  0x8b   : > { %489 = vrot.lane.b32.xlu2 %v1467_v48, %s1279_s28 }
  0x8c   : > { %487 = vrot.lane.b32.xlu1 %v1473_v50, %s1279_s28  ;;  %485 = vrot.lane.b32.xlu0 %v1479_v52, %s1279_s28 }
  0x8d   : > { %v1631_v19 = vpop.permute.xlu2 %391 }
  0x8e   : > { %v374_v14 = vpop.permute.xlu1 %373  ;;  %v370_v30 = vpop.permute.xlu0 %369 }
  0x93   : > { %495 = vrot.lane.b32.xlu2 %v1634_v31, %s1279_s28 }
  0x94   : > { %493 = vrot.lane.b32.xlu1 %v1637_v32, %s1279_s28  ;;  %491 = vrot.lane.b32.xlu0 %v1470_v49, %s1279_s28 }
  0x95   : > { %v1642_v12 = vpop.permute.xlu2 %397 }
  0x96   : > { %v376_v27 = vpop.permute.xlu1 %375  ;;  %v372_v43 = vpop.permute.xlu0 %371 }
  0x97   : > { %v755_v44 = vsel %vm753_vm3, %v1365_v8, %v372_v43 }
  0x9b   : > { %517 = vrot.lane.b32.xlu2 %v1374_v13, %s1280_s29 }
  0x9c   : > { %515 = vrot.lane.b32.xlu1 %v1398_v22, %s1280_s29  ;;  %513 = vrot.lane.b32.xlu0 %v1385_v16, %s1280_s29  ;;  %v758_v16 = vsel %vm753_vm3, %v1347_v0, %v378_v61 }
  0x9d   : > { %v420_v53 = vpop.permute.xlu2 %419 }
  0x9e   : > { %v384_v40 = vpop.permute.xlu1 %383  ;;  %v1653_v57 = vsel %vm770_vm2, %v755_v44, %v420_v53  ;;  %v382_v62 = vpop.permute.xlu0 %381 }
  0x9f   : > { %v761_v51 = vsel %vm753_vm3, %v1408_v26, %v384_v40  ;;  %v754_v40 = vsel %vm753_vm3, %v1362_v7, %v370_v30 }
  0xa3   : > { %523 = vrot.lane.b32.xlu2 %v1430_v35, %s1280_s29 }
  0xa4   : > { %521 = vrot.lane.b32.xlu1 %v1433_v36, %s1280_s29  ;;  %519 = vrot.lane.b32.xlu0 %v1395_v21, %s1280_s29 }
  0xa5   : > { %v426_v22 = vpop.permute.xlu2 %425 }
  0xa6   : > { %v390_v8 = vpop.permute.xlu1 %389  ;;  %v1664_v63 = vsel %vm770_vm2, %v758_v16, %v426_v22  ;;  %v388_v38 = vpop.permute.xlu0 %387 }
  0xa7   : > { %v764_v53 = vsel %vm753_vm3, %v1442_v39, %v390_v8  ;;  %v756_v8 = vsel %vm753_vm3, %v1353_v2, %v374_v14  ;;  %v359_v2 = vrot.slane %v1637_v32, 2 }
  0xab   : > { %529 = vrot.lane.b32.xlu2 %v1461_v46, %s1280_s29 }
  0xac   : > { %527 = vrot.lane.b32.xlu1 %v1464_v47, %s1280_s29  ;;  %525 = vrot.lane.b32.xlu0 %v1427_v34, %s1280_s29 }
  0xad   : > { %v432_v9 = vpop.permute.xlu2 %431 }
  0xae   : > { %v396_v61 = vpop.permute.xlu1 %395  ;;  %v1675_v43 = vsel %vm770_vm2, %v761_v51, %v432_v9  ;;  %v394_v44 = vpop.permute.xlu0 %393 }
  0xaf   : > { %v767_v7 = vsel %vm753_vm3, %v1473_v50, %v396_v61  ;;  %v309_v61 = vrot.slane %v1634_v31, 1 }
  0xb3   : > { %535 = vrot.lane.b32.xlu2 %v1496_v59, %s1280_s29 }
  0xb4   : > { %533 = vrot.lane.b32.xlu1 %v1499_v60, %s1280_s29  ;;  %531 = vrot.lane.b32.xlu0 %v1458_v45, %s1280_s29 }
  0xb5   : > { %v438_v16 = vpop.permute.xlu2 %437 }
  0xb6   : > { %v1688_v22 = vsel %vm770_vm2, %v764_v53, %v438_v16  ;;  %v418_v51 = vpop.permute.xlu1 %417  ;;  %v1690_v9 = vpop.permute.xlu0 %399  ;;  %v757_v53 = vsel %vm753_vm3, %v1358_v5, %v376_v27  ;;  %v360_v5 = vrot.slane %v1634_v31, 2  ;;  %v308_v27 = vrot.slane %v1637_v32, 1 }
  0xb7   : > { %v771_v35 = vsel %vm770_vm2, %v754_v40, %v418_v51 }
  0xbb   : > { %585 = vrot.lane.b32.xlu2 %v1608_v15, %s1281_s30 }
  0xbc   : > { %577 = vrot.lane.b32.xlu1 %v1568_v54, %s1281_s30  ;;  %537 = vrot.lane.b32.xlu0 %v1493_v58, %s1280_s29 }
  0xbd   : > { %v444_v30 = vpop.permute.xlu2 %443 }
  0xbe   : > { %v1706_v16 = vsel %vm770_vm2, %v767_v7, %v444_v30  ;;  %v424_v40 = vpop.permute.xlu1 %423  ;;  %v422_v51 = vpop.permute.xlu0 %421  ;;  %v760_v7 = vsel %vm753_vm3, %v1414_v28, %v382_v62  ;;  %v762_v62 = vsel %vm753_vm3, %v1402_v24, %v1626_v18 }
  0xbf   : > { %v774_v45 = vsel %vm770_vm2, %v757_v53, %v424_v40  ;;  %v1710_v26 = vsel %vm770_vm2, %v756_v8, %v422_v51 }
  0xc3   : > { %673 = vrot.lane.b32.xlu2 %v1499_v60, %s1282_s4  ;;  %v759_v60 = vsel %vm753_vm3, %v1350_v1, %v1621_v17  ;;  %v1740_v17 = vsel %vm267_vm0, %v308_v27, %v309_v61 }
  0xc4   : > { %633 = vrot.lane.b32.xlu1 %v1637_v32, %s1283_s5  ;;  %625 = vrot.lane.b32.xlu0 %v1479_v52, %s1283_s5  ;;  %v1735_v32 = vsel %vm318_vm1, %v359_v2, %v360_v5  ;;  %v763_v2 = vsel %vm753_vm3, %v1405_v25, %v388_v38  ;;  %v766_v38 = vsel %vm753_vm3, %v1479_v52, %v394_v44 }
  0xc5   : > { %v466_v14 = vpop.permute.xlu2 %465  ;;  %v768_v52 = vsel %vm753_vm3, %v1467_v48, %v1642_v12 }
  0xc6   : > { %v1728_v30 = vsel %vm787_vm4, %v771_v35, %v466_v14  ;;  %v430_v8 = vpop.permute.xlu1 %429  ;;  %v428_v53 = vpop.permute.xlu0 %427 }
  0xc7   : > { %v777_v40 = vsel %vm770_vm2, %v760_v7, %v430_v8  ;;  %v776_v51 = vsel %vm770_vm2, %v759_v60, %v428_v53 }
  0xcb   : > { %729 = vrot.lane.b32.xlu2 %v1735_v32, %s1284_s6 }
  0xcc   : > { %721 = vrot.lane.b32.xlu1 %v1590_v4, %s1284_s6  ;;  %681 = vrot.lane.b32.xlu0 %v1740_v17, %s1282_s4 }
  0xcd   : > { %v472_v35 = vpop.permute.xlu2 %471 }
  0xce   : > { %v1754_v14 = vsel %vm787_vm4, %v774_v45, %v472_v35  ;;  %v436_v27 = vpop.permute.xlu1 %435  ;;  %v434_v60 = vpop.permute.xlu0 %433  ;;  %v765_v45 = vsel %vm753_vm3, %v1436_v37, %v1631_v19  ;;  %v769_v19 = vsel %vm753_vm3, %v1470_v49, %v1690_v9 }
  0xcf   : > { %v780_v7 = vsel %vm770_vm2, %v763_v2, %v436_v27  ;;  %v779_v8 = vsel %vm770_vm2, %v762_v62, %v434_v60 }
  0xd3   : > { %539 = vrot.lane.b32.xlu2 %v1517_v10, %s1280_s29 }
  0xd4   : > { %569 = vrot.lane.b32.xlu1 %v1551_v41, %s1281_s30  ;;  %561 = vrot.lane.b32.xlu0 %v1535_v29, %s1281_s30 }
  0xd5   : > { %v478_v18 = vpop.permute.xlu2 %477 }
  0xd6   : > { %v1770_v53 = vsel %vm787_vm4, %v777_v40, %v478_v18  ;;  %v442_v35 = vpop.permute.xlu1 %441  ;;  %v440_v62 = vpop.permute.xlu0 %439 }
  0xd7   : > { %v783_v2 = vsel %vm770_vm2, %v766_v38, %v442_v35  ;;  %v782_v27 = vsel %vm770_vm2, %v765_v45, %v440_v62  ;;  %v233_v35 = vld [vmem:[%s1344_s25 + $0xd0] sm:$0x3] }
  0xdb   : > { %579 = vrot.lane.b32.xlu2 %v1593_v6, %s1281_s30 }
  0xdc   : > { %617 = vrot.lane.b32.xlu1 %v1402_v24, %s1283_s5  ;;  %609 = vrot.lane.b32.xlu0 %v1347_v0, %s1283_s5 }
  0xdd   : > { %v484_v29 = vpop.permute.xlu2 %483 }
  0xde   : > { %v1787_v44 = vsel %vm787_vm4, %v780_v7, %v484_v29  ;;  %v448_v40 = vpop.permute.xlu1 %447  ;;  %v446_v60 = vpop.permute.xlu0 %445 }
  0xdf   : > { %v786_v24 = vsel %vm770_vm2, %v769_v19, %v448_v40  ;;  %v785_v18 = vsel %vm770_vm2, %v768_v52, %v446_v60 }
  0xe3   : > { %665 = vrot.lane.b32.xlu2 %v1427_v34, %s1282_s4 }
  0xe4   : > { %657 = vrot.lane.b32.xlu1 %v1374_v13, %s1282_s4  ;;  %587 = vrot.lane.b32.xlu0 %v1605_v11, %s1281_s30  ;;  %v311_v13 = vrot.slane %v233_v35, 1 }
  0xe5   : > { %v490_v0 = vpop.permute.xlu2 %489 }
  0xe6   : > { %v1798_v12 = vsel %vm787_vm4, %v783_v2, %v490_v0  ;;  %v470_v9 = vpop.permute.xlu1 %469  ;;  %v468_v7 = vpop.permute.xlu0 %467  ;;  %v1820_v52 = vsel %vm267_vm0, %v309_v61, %v311_v13  ;;  %v234_v13 = vld [vmem:[%s1344_s25 + $0xd8] sm:$0xff] }
  0xe7   : > { %v790_v45 = vsel %vm787_vm4, %v1710_v26, %v470_v9  ;;  %v789_v38 = vsel %vm787_vm4, %v1653_v57, %v468_v7 }
  0xeb   : > { %705 = vrot.lane.b32.xlu2 %v1529_v20, %s1284_s6 }
  0xec   : > { %635 = vrot.lane.b32.xlu1 %v1634_v31, %s1283_s5  ;;  %627 = vrot.lane.b32.xlu0 %v1473_v50, %s1283_s5 }
  0xed   : > { %v496_v34 = vpop.permute.xlu2 %495 }
  0xee   : > { %v1812_v62 = vsel %vm787_vm4, %v786_v24, %v496_v34  ;;  %v476_v2 = vpop.permute.xlu1 %475  ;;  %v474_v26 = vpop.permute.xlu0 %473  ;;  %v1914_v34 = vld [vmem:[%s1344_s25 + $0xe0] sm:$0xff] }
  0xef   : > { %v793_v29 = vsel %vm787_vm4, %v776_v51, %v476_v2  ;;  %v792_v57 = vsel %vm787_vm4, %v1664_v63, %v474_v26  ;;  %v362_v51 = vrot.slane %v233_v35, 2  ;;  %v313_v2 = vrot.slane %v234_v13, 1 }
  0xf3   : > { %683 = vrot.lane.b32.xlu2 %v1820_v52, %s1282_s4 }
  0xf4   : > { %675 = vrot.lane.b32.xlu1 %v1496_v59, %s1282_s4  ;;  %713 = vrot.lane.b32.xlu0 %v1574_v56, %s1284_s6  ;;  %v1841_v59 = vsel %vm318_vm1, %v360_v5, %v362_v51  ;;  %v889_v51 = vld [vmem:[%s2177_s1] sm:$0xff] }
  0xf5   : > { %v518_v50 = vpop.permute.xlu2 %517 }
  0xf6   : > { %v1829_v19 = vsel %vm804_vm5, %v790_v45, %v518_v50  ;;  %v482_v63 = vpop.permute.xlu1 %481  ;;  %v480_v40 = vpop.permute.xlu0 %479 }
  0xf7   : > { %v1832_v61 = vsel %vm787_vm4, %v779_v8, %v482_v63  ;;  %v1836_v60 = vsel %vm787_vm4, %v1675_v43, %v480_v40 }
  0xfb   : > { %563 = vrot.lane.b32.xlu2 %v1532_v23, %s1281_s30 }
  0xfc   : > { %731 = vrot.lane.b32.xlu1 %v1841_v59, %s1284_s6  ;;  %723 = vrot.lane.b32.xlu0 %v1587_v3, %s1284_s6 }
  0xfd   : > { %v524_v8 = vpop.permute.xlu2 %523 }
  0xfe   : > { %v1850_v24 = vsel %vm804_vm5, %v793_v29, %v524_v8  ;;  %v488_v43 = vpop.permute.xlu1 %487  ;;  %v486_v0 = vpop.permute.xlu0 %485  ;;  %v314_v29 = vrot.slane %v1914_v34, 1 }
  0xff   : > { %v799_v31 = vsel %vm787_vm4, %v782_v27, %v488_v43  ;;  %v1855_v5 = vsel %vm787_vm4, %v1688_v22, %v486_v0  ;;  %v365_v43 = vrot.slane %v1914_v34, 2 }
 0x100   : > { %v315_v8 = vsel %vm267_vm0, %v313_v2, %v314_v29 }
 0x103   : > { %611 = vrot.lane.b32.xlu2 %v1350_v1, %s1283_s5 }
 0x104   : > { %541 = vrot.lane.b32.xlu1 %v1740_v17, %s1280_s29  ;;  %571 = vrot.lane.b32.xlu0 %v1548_v33, %s1281_s30 }
 0x105   : > { %v1863_v23 = vpop.permute.xlu2 %529 }
 0x106   : > { %v494_v9 = vpop.permute.xlu1 %493  ;;  %v492_v7 = vpop.permute.xlu0 %491 }
 0x107   : > { %v1866_v45 = vsel %vm787_vm4, %v785_v18, %v494_v9  ;;  %v1870_v22 = vsel %vm787_vm4, %v1706_v16, %v492_v7 }
 0x10b   : > { %589 = vrot.lane.b32.xlu2 %v1735_v32, %s1281_s30 }
 0x10c   : > { %581 = vrot.lane.b32.xlu1 %v1590_v4, %s1281_s30  ;;  %619 = vrot.lane.b32.xlu0 %v1405_v25, %s1283_s5 }
 0x10d   : > { %v536_v1 = vpop.permute.xlu2 %535 }
 0x10e   : > { %v1879_v17 = vsel %vm804_vm5, %v799_v31, %v536_v1  ;;  %v516_v27 = vpop.permute.xlu1 %515  ;;  %v514_v18 = vpop.permute.xlu0 %513 }
 0x10f   : > { %v1882_v35 = vsel %vm804_vm5, %v789_v38, %v516_v27  ;;  %v1886_v16 = vsel %vm804_vm5, %v1728_v30, %v514_v18  ;;  %v893_v30 = vld [vmem:[%s2177_s1 + $0x20] sm:$0xf] }
 0x110   : > { %1172 = vmatpush.msk.msra.mxu2 %vm947_vm6, %v893_v30  ;;  %1173 = vmatpush.msk.msra.mxu3 %vm947_vm6, %v893_v30 }
 0x111   : > { %1152 = vmatpush.msk.msra.mxu0 %vm947_vm6, %v893_v30  ;;  %1171 = vmatpush.msk.msra.mxu1 %vm947_vm6, %v893_v30 }
 0x113   : > { %629 = vrot.lane.b32.xlu2 %v1467_v48, %s1283_s5 }
 0x114   : > { %667 = vrot.lane.b32.xlu1 %v1464_v47, %s1282_s4  ;;  %659 = vrot.lane.b32.xlu0 %v1395_v21, %s1282_s4  ;;  %v892_v21 = vld [vmem:[%s2177_s1 + $0x18] sm:$0xff]  ;;  %v891_v47 = vld [vmem:[%s2177_s1 + $0x10] sm:$0xff] }
 0x115   : > { %v1894_v25 = vpop.permute.xlu2 %585  ;;  %1175 = vmatpush.msra.mxu2 %v892_v21  ;;  %1176 = vmatpush.msra.mxu3 %v892_v21 }
 0x116   : > { %v522_v4 = vpop.permute.xlu1 %521  ;;  %v520_v32 = vpop.permute.xlu0 %519  ;;  %963 = vmatpush.msra.mxu0 %v892_v21  ;;  %1174 = vmatpush.msra.mxu1 %v892_v21 }
 0x117   : > { %v1900_v38 = vsel %vm804_vm5, %v792_v57, %v522_v4  ;;  %v1904_v48 = vsel %vm804_vm5, %v1754_v14, %v520_v32  ;;  %1178 = vmatpush.msra.mxu2 %v891_v47  ;;  %v890_v14 = vld [vmem:[%s2177_s1 + $0x8] sm:$0xff]  ;;  %1179 = vmatpush.msra.mxu3 %v891_v47 }
 0x118   : > { %964 = vmatpush.msra.mxu0 %v891_v47  ;;  %1177 = vmatpush.msra.mxu1 %v891_v47  ;;  %v236_v47 = vld [vmem:[%s1344_s25 + $0xe8] sm:$0x3]  ;;  %s1150_s25 = sshll.u32 %s2200_s13, 5 }
 0x119   : > { %1181 = vmatpush.msra.mxu2 %v890_v14  ;;  %1182 = vmatpush.msra.mxu3 %v890_v14  ;;  %s204_s26 = sadd.s32 %s1150_s25, %s1149_s24 }
 0x11a   : > { %965 = vmatpush.msra.mxu0 %v890_v14  ;;  %1180 = vmatpush.msra.mxu1 %v890_v14  ;;  %v316_v14 = vrot.slane %v236_v47, 1  ;;  %s1151_s27 = sshll.u32 %s204_s26, 3 }
 0x11b   : > { %715 = vrot.lane.b32.xlu2 %v1571_v55, %s1284_s6  ;;  %1184 = vmatpush.msra.mxu2 %v889_v51 }
 0x11c   : > { %707 = vrot.lane.b32.xlu1 %v1554_v42, %s1284_s6  ;;  %637 = vrot.lane.b32.xlu0 %v234_v13, %s1283_s5 }
 0x11d   : > { %v674_v26 = vpop.permute.xlu2 %673  ;;  %1185 = vmatpush.msra.mxu3 %v889_v51  ;;  %966 = vmatpush.msra.mxu0 %v889_v51 }
 0x11e   : > { %v528_v57 = vpop.permute.xlu1 %527  ;;  %v526_v50 = vpop.permute.xlu0 %525  ;;  %1183 = vmatpush.msra.mxu1 %v889_v51 }
 0x11f   : > { %v1930_v63 = vsel %vm804_vm5, %v1836_v60, %v528_v57  ;;  %v1934_v40 = vsel %vm804_vm5, %v1770_v53, %v526_v50  ;;  %v364_v53 = vrot.slane %v234_v13, 2  ;;  %v367_v13 = vrot.slane %v236_v47, 2 }
 0x120   : > { %v317_v57 = vsel %vm267_vm0, %v314_v29, %v316_v14 }
 0x123   : > { %725 = vrot.lane.b32.xlu2 %v1608_v15, %s1284_s6  ;;  %v366_v15 = vsel %vm318_vm1, %v364_v53, %v365_v43 }
 0x124   : > { %685 = vrot.lane.b32.xlu1 %v315_v8, %s1282_s4  ;;  %677 = vrot.lane.b32.xlu0 %v1493_v58, %s1282_s4  ;;  %v2186_v8 = vld [vmem:[#allocation2_spill] sm:$0xff] }
 0x125   : > { %v730_v60 = vpop.permute.xlu2 %729 }
 0x126   : > { %v534_v0 = vpop.permute.xlu1 %533  ;;  %v532_v31 = vpop.permute.xlu0 %531 }
 0x127   : > { %v1947_v9 = vsel %vm804_vm5, %v1855_v5, %v534_v0  ;;  %v1951_v7 = vsel %vm804_vm5, %v1787_v44, %v532_v31  ;;  %v2188_v0 = vld [vmem:[#allocation3_spill] sm:$0xff] }
 0x12b   : > { %573 = vrot.lane.b32.xlu2 %v1574_v56, %s1281_s30 }
 0x12c   : > { %565 = vrot.lane.b32.xlu1 %v1529_v20, %s1281_s30  ;;  %733 = vrot.lane.b32.xlu0 %v366_v15, %s1284_s6  ;;  %v813_v20 = vsel %vm804_vm5, %v1832_v61, %v1863_v23 }
 0x12d   : > { %v1959_v58 = vpop.permute.xlu2 %539 }
 0x12e   : > { %v578_v1 = vpop.permute.xlu1 %577  ;;  %v538_v27 = vpop.permute.xlu0 %537 }
 0x12f   : > { %v830_v18 = vsel %vm821_vm7, %v813_v20, %v578_v1 }
 0x133   : > { %621 = vrot.lane.b32.xlu2 %v1442_v39, %s1283_s5  ;;  %v817_v39 = vsel %vm804_vm5, %v1798_v12, %v538_v27 }
 0x134   : > { %613 = vrot.lane.b32.xlu1 %v1414_v28, %s1283_s5  ;;  %543 = vrot.lane.b32.xlu0 %v1820_v52, %s1280_s29  ;;  %v834_v52 = vsel %vm821_vm7, %v817_v39, %v1894_v25 }
 0x135   : > { %v1967_v44 = vpop.permute.xlu2 %579 }
 0x136   : > { %v634_v56 = vpop.permute.xlu1 %633  ;;  %v626_v5 = vpop.permute.xlu0 %625 }
 0x137   : > { %v847_v28 = vsel %vm838_vm8, %v830_v18, %v626_v5  ;;  %v851_v12 = vsel %vm838_vm8, %v834_v52, %v634_v56 }
 0x138   : > { %v864_v32 = vsel %vm855_vm9, %v847_v28, %v674_v26  ;;  %v368_v26 = vsel %vm318_vm1, %v365_v43, %v367_v13  ;;  %v2187_v43 = vld [vmem:[#allocation4_spill] sm:$0xff] }
 0x13b   : > { %661 = vrot.lane.b32.xlu2 %v1433_v36, %s1282_s4 }
 0x13c   : > { %591 = vrot.lane.b32.xlu1 %v1841_v59, %s1281_s30  ;;  %583 = vrot.lane.b32.xlu0 %v1587_v3, %s1281_s30 }
 0x13d   : > { %v666_v61 = vpop.permute.xlu2 %665 }
 0x13e   : > { %v722_v23 = vpop.permute.xlu1 %721  ;;  %v682_v4 = vpop.permute.xlu0 %681 }
 0x13f   : > { %v868_v36 = vsel %vm855_vm9, %v851_v12, %v682_v4  ;;  %v881_v59 = vsel %vm872_vm10, %v864_v32, %v722_v23 }
 0x140   : > { %1161 = vmatmul.msk.f32.vlgmr.msra.gmra.mxu2 %vm898_vm11, %v881_v59  ;;  %v885_v3 = vsel %vm872_vm10, %v868_v36, %v730_v60 }
 0x141   : > { %1165 = vmatmul.msk.f32.vlgmr.msra.gmra.mxu3 %vm898_vm11, %v885_v3 }
 0x143   : > { %639 = vrot.lane.b32.xlu2 %v1914_v34, %s1283_s5 }
 0x144   : > { %631 = vrot.lane.b32.xlu1 %v1470_v49, %s1283_s5  ;;  %669 = vrot.lane.b32.xlu0 %v1461_v46, %s1282_s4 }
 0x145   : > { %v706_v21 = vpop.permute.xlu2 %705 }
 0x146   : > { %v570_v25 = vpop.permute.xlu1 %569  ;;  %v562_v30 = vpop.permute.xlu0 %561 }
 0x147   : > { %v826_v53 = vsel %vm821_vm7, %v1900_v38, %v570_v25  ;;  %v818_v38 = vsel %vm804_vm5, %v1870_v22, %v1959_v58 }
 0x14b   : > { %679 = vrot.lane.b32.xlu2 %v1517_v10, %s1282_s4  ;;  %v822_v10 = vsel %vm821_vm7, %v1886_v16, %v562_v30 }
 0x14c   : > { %717 = vrot.lane.b32.xlu1 %v1568_v54, %s1284_s6  ;;  %709 = vrot.lane.b32.xlu0 %v1551_v41, %s1284_s6 }
 0x14d   : > { %v684_v46 = vpop.permute.xlu2 %683 }
 0x14e   : > { %v618_v2 = vpop.permute.xlu1 %617  ;;  %v610_v49 = vpop.permute.xlu0 %609 }
 0x14f   : > { %v839_v41 = vsel %vm838_vm8, %v822_v10, %v610_v49  ;;  %v843_v60 = vsel %vm838_vm8, %v826_v53, %v618_v2 }
 0x153   : > { %735 = vrot.lane.b32.xlu2 %v368_v26, %s1284_s6 }
 0x154   : > { %727 = vrot.lane.b32.xlu1 %v1605_v11, %s1284_s6  ;;  %687 = vrot.lane.b32.xlu0 %v317_v57, %s1282_s4 }
 0x155   : > { %v564_v29 = vpop.permute.xlu2 %563 }
 0x156   : > { %v658_v54 = vpop.permute.xlu1 %657  ;;  %v588_v50 = vpop.permute.xlu0 %587  ;;  %v823_v25 = vsel %vm821_vm7, %v1882_v35, %v564_v29 }
 0x157   : > { %v856_v51 = vsel %vm855_vm9, %v839_v41, %v658_v54  ;;  %v835_v27 = vsel %vm821_vm7, %v818_v38, %v588_v50 }
 0x158   : > { %v873_v34 = vsel %vm872_vm10, %v856_v51, %v706_v21 }
 0x159   : > { %1153 = vmatmul.msk.f32.vlgmr.msra.gmra.mxu0 %vm898_vm11, %v873_v34 }
 0x15b   : > { %615 = vrot.lane.b32.xlu2 %v2186_v8, %s1283_s5 }
 0x15c   : > { %575 = vrot.lane.b32.xlu1 %v1571_v55, %s1281_s30  ;;  %567 = vrot.lane.b32.xlu0 %v1554_v42, %s1281_s30  ;;  %v860_v42 = vsel %vm855_vm9, %v843_v60, %v666_v61  ;;  %s2109_s30 = scalar_lea.vmem %s2179_s3, %s1151_s27 }
 0x15d   : > { %v612_v55 = vpop.permute.xlu2 %611 }
 0x15e   : > { %v636_v11 = vpop.permute.xlu1 %635  ;;  %v628_v16 = vpop.permute.xlu0 %627  ;;  %v840_v30 = vsel %vm838_vm8, %v823_v25, %v612_v55 }
 0x15f   : > { %v852_v56 = vsel %vm838_vm8, %v835_v27, %v636_v11 }
 0x160   : > { %v869_v58 = vsel %vm855_vm9, %v852_v56, %v684_v46 }
 0x163   : > { %671 = vrot.lane.b32.xlu2 %v2187_v43, %s1282_s4 }
 0x164   : > { %663 = vrot.lane.b32.xlu1 %v2188_v0, %s1282_s4  ;;  %623 = vrot.lane.b32.xlu0 %v1436_v37, %s1283_s5  ;;  %v831_v37 = vsel %vm821_vm7, %v1951_v7, %v1967_v44 }
 0x165   : > { %v848_v5 = vsel %vm838_vm8, %v831_v37, %v628_v16  ;;  %v590_v39 = vpop.permute.xlu2 %589 }
 0x166   : > { %v676_v31 = vpop.permute.xlu1 %675  ;;  %v714_v15 = vpop.permute.xlu0 %713 }
 0x167   : > { %v877_v1 = vsel %vm872_vm10, %v860_v42, %v714_v15  ;;  %v865_v20 = vsel %vm855_vm9, %v848_v5, %v676_v31 }
 0x168   : > { %1157 = vmatmul.msk.f32.vlgmr.msra.gmra.mxu1 %vm898_vm11, %v877_v1 }
 0x16c   : > { %719 = vrot.lane.b32.xlu1 %v1593_v6, %s1284_s6  ;;  %711 = vrot.lane.b32.xlu0 %v1548_v33, %s1284_s6 }
 0x16d   : > { %v630_v33 = vpop.permute.xlu2 %629 }
 0x16e   : > { %v732_v18 = vpop.permute.xlu1 %731  ;;  %v724_v22 = vpop.permute.xlu0 %723 }
 0x16f   : > { %v882_v28 = vsel %vm872_vm10, %v865_v20, %v724_v22  ;;  %v886_v52 = vsel %vm872_vm10, %v869_v58, %v732_v18 }
 0x170   : > { %1162 = vmatmul.msk.f32.gmra.mxu2 %vm898_vm11, %v882_v28  ;;  %1166 = vmatmul.msk.f32.gmra.mxu3 %vm898_vm11, %v886_v52 }
 0x175   : > { %v716_v12 = vpop.permute.xlu2 %715 }
 0x176   : > { %v542_v6 = vpop.permute.xlu1 %541  ;;  %v572_v7 = vpop.permute.xlu0 %571 }
 0x177   : > { %v827_v23 = vsel %vm821_vm7, %v1850_v24, %v572_v7  ;;  %v819_v41 = vsel %vm804_vm5, %v1866_v45, %v542_v6 }
 0x178   : > { %v836_v54 = vsel %vm821_vm7, %v819_v41, %v590_v39 }
 0x17d   : > { %v726_v21 = vpop.permute.xlu2 %725 }
 0x17e   : > { %v582_v44 = vpop.permute.xlu1 %581  ;;  %v620_v61 = vpop.permute.xlu0 %619 }
 0x17f   : > { %v844_v4 = vsel %vm838_vm8, %v827_v23, %v620_v61  ;;  %v832_v2 = vsel %vm821_vm7, %v1947_v9, %v582_v44 }
 0x180   : > { %v849_v26 = vsel %vm838_vm8, %v832_v2, %v630_v33 }
 0x185   : > { %v574_v57 = vpop.permute.xlu2 %573 }
 0x186   : > { %v668_v32 = vpop.permute.xlu1 %667  ;;  %v660_v36 = vpop.permute.xlu0 %659  ;;  %v828_v42 = vsel %vm821_vm7, %v1934_v40, %v574_v57  ;;  %v2097_v40 = vld [vmem:[%s2178_s2] ss:$0 sm:$0xff] }
 0x187   : > { %v861_v59 = vsel %vm855_vm9, %v844_v4, %v668_v32  ;;  %v857_v47 = vsel %vm855_vm9, %v840_v30, %v660_v36 }
 0x188   : > { %v878_v3 = vsel %vm872_vm10, %v861_v59, %v716_v12 }
 0x189   : > { %1158 = vmatmul.msk.f32.gmra.mxu1 %vm898_vm11, %v878_v3 }
 0x18d   : > { %v622_v8 = vpop.permute.xlu2 %621 }
 0x18e   : > { %v708_v13 = vpop.permute.xlu1 %707  ;;  %v638_v24 = vpop.permute.xlu0 %637  ;;  %v845_v1 = vsel %vm838_vm8, %v828_v42, %v622_v8 }
 0x18f   : > { %v874_v14 = vsel %vm872_vm10, %v857_v47, %v708_v13  ;;  %v853_v50 = vsel %vm838_vm8, %v836_v54, %v638_v24 }
 0x190   : > { %1154 = vmatmul.msk.f32.gmra.mxu0 %vm898_vm11, %v874_v14 }
 0x195   : > { %v662_v45 = vpop.permute.xlu2 %661 }
 0x196   : > { %v686_v49 = vpop.permute.xlu1 %685  ;;  %v678_v46 = vpop.permute.xlu0 %677 }
 0x197   : > { %v866_v35 = vsel %vm855_vm9, %v849_v26, %v678_v46  ;;  %v870_v9 = vsel %vm855_vm9, %v853_v50, %v686_v49 }
 0x198   : > { %v883_v10 = vsel %vm872_vm10, %v866_v35, %v726_v21 }
 0x199   : > { %1163 = vmatmul.msk.f32.gmra.mxu2 %vm898_vm11, %v883_v10 }
 0x19d   : > { %v640_v43 = vpop.permute.xlu2 %639 }
 0x19e   : > { %v566_v51 = vpop.permute.xlu1 %565  ;;  %v734_v34 = vpop.permute.xlu0 %733 }
 0x19f   : > { %v887_v29 = vsel %vm872_vm10, %v870_v9, %v734_v34  ;;  %v824_v31 = vsel %vm821_vm7, %v1829_v19, %v566_v51 }
 0x1a0   : > { %1167 = vmatmul.msk.f32.gmra.mxu3 %vm898_vm11, %v887_v29 }
 0x1a5   : > { %v680_v38 = vpop.permute.xlu2 %679 }
 0x1a6   : > { %v614_v11 = vpop.permute.xlu1 %613  ;;  %v544_v16 = vpop.permute.xlu0 %543 }
 0x1a7   : > { %v841_v15 = vsel %vm838_vm8, %v824_v31, %v614_v11  ;;  %v820_v18 = vsel %vm804_vm5, %v1812_v62, %v544_v16 }
 0x1a8   : > { %v858_v27 = vsel %vm855_vm9, %v841_v15, %v662_v45 }
 0x1ad   : > { %v736_v7 = vpop.permute.xlu2 %735 }
 0x1ae   : > { %v592_v53 = vpop.permute.xlu1 %591  ;;  %v584_v60 = vpop.permute.xlu0 %583 }
 0x1af   : > { %v833_v22 = vsel %vm821_vm7, %v1879_v17, %v584_v60  ;;  %v837_v58 = vsel %vm821_vm7, %v820_v18, %v592_v53 }
 0x1b0   : > { %v854_v17 = vsel %vm838_vm8, %v837_v58, %v640_v43 }
 0x1b5   : > { %v616_v25 = vpop.permute.xlu2 %615 }
 0x1b6   : > { %v632_v0 = vpop.permute.xlu1 %631  ;;  %v670_v55 = vpop.permute.xlu0 %669 }
 0x1b7   : > { %v862_v56 = vsel %vm855_vm9, %v845_v1, %v670_v55  ;;  %v850_v39 = vsel %vm838_vm8, %v833_v22, %v632_v0 }
 0x1b8   : > { %v867_v33 = vsel %vm855_vm9, %v850_v39, %v680_v38 }
 0x1bd   : > { %v672_v26 = vpop.permute.xlu2 %671 }
 0x1be   : > { %v718_v37 = vpop.permute.xlu1 %717  ;;  %v710_v5 = vpop.permute.xlu0 %709 }
 0x1bf   : > { %v875_v20 = vsel %vm872_vm10, %v858_v27, %v710_v5  ;;  %v879_v19 = vsel %vm872_vm10, %v862_v56, %v718_v37 }
 0x1c0   : > { %1155 = vmatmul.msk.f32.gmra.mxu0 %vm898_vm11, %v875_v20  ;;  %1159 = vmatmul.msk.f32.gmra.mxu1 %vm898_vm11, %v879_v19 }
 0x1c3   : > { %v992_v28 = vpop.f32.mrf.mxu2 }
 0x1c4   : > { %v993_v52 = vadd.f32 %v2097_v40, %v992_v28  ;;  %v1004_v6 = vpop.f32.mrf.mxu3 }
 0x1c5   : > { %v1005_v62 = vadd.f32 %v2097_v40, %v1004_v6 }
 0x1c6   : > { %v1024_v44 = vmax.f32 %v993_v52, 0.0  ;;  %v728_v61 = vpop.permute.xlu1 %727  ;;  %v688_v12 = vpop.permute.xlu0 %687 }
 0x1c7   : > { %v1028_v23 = vmax.f32 %v1005_v62, 0.0  ;;  %v871_v4 = vsel %vm855_vm9, %v854_v17, %v688_v12  ;;  %v884_v32 = vsel %vm872_vm10, %v867_v33, %v728_v61 }
 0x1c8   : > { %1040 = vst [vmem:[%s2109_s30 + $0x40] sm:$0xff] %v1024_v44  ;;  %1164 = vmatmul.msk.f32.gmra.mxu2 %vm898_vm11, %v884_v32  ;;  %v888_v36 = vsel %vm872_vm10, %v871_v4, %v736_v7 }
 0x1c9   : > { %1044 = vst [vmem:[%s2109_s30 + $0x60] sm:$0xff] %v1028_v23  ;;  %1168 = vmatmul.msk.f32.gmra.mxu3 %vm898_vm11, %v888_v36 }
 0x1ce   : > { %v576_v59 = vpop.permute.xlu1 %575  ;;  %v568_v3 = vpop.permute.xlu0 %567 }
 0x1cf   : > { %v829_v14 = vsel %vm821_vm7, %v1930_v63, %v576_v59  ;;  %v825_v2 = vsel %vm821_vm7, %v1904_v48, %v568_v3 }
 0x1d0   : > { %v842_v46 = vsel %vm838_vm8, %v825_v2, %v616_v25 }
 0x1d6   : > { %v664_v30 = vpop.permute.xlu1 %663  ;;  %v968_v21 = vpop.f32.mrf.mxu0 }
 0x1d7   : > { %v969_v47 = vadd.f32 %v2097_v40, %v968_v21  ;;  %v624_v13 = vpop.permute.xlu0 %623  ;;  %v859_v10 = vsel %vm855_vm9, %v842_v46, %v664_v30 }
 0x1d8   : > { %v846_v49 = vsel %vm838_vm8, %v829_v14, %v624_v13 }
 0x1d9   : > { %v1016_v24 = vmax.f32 %v969_v47, 0.0  ;;  %v863_v57 = vsel %vm855_vm9, %v846_v49, %v672_v26 }
 0x1db   : > { %1032 = vst [vmem:[%s2109_s30] sm:$0xff] %v1016_v24 }
 0x1de   : > { %v720_v35 = vpop.permute.xlu1 %719 }
 0x1df   : > { %v712_v41 = vpop.permute.xlu0 %711  ;;  %v880_v63 = vsel %vm872_vm10, %v863_v57, %v720_v35 }
 0x1e0   : > { %v876_v54 = vsel %vm872_vm10, %v859_v10, %v712_v41  ;;  %1160 = vmatmul.msk.f32.gmra.mxu1 %vm898_vm11, %v880_v63 }
 0x1e1   : > { %1156 = vmatmul.msk.f32.gmra.mxu0 %vm898_vm11, %v876_v54 }
 0x1e5   : > { %v980_v48 = vpop.f32.mrf.mxu1 }
 0x1e6   : > { %v981_v50 = vadd.f32 %v2097_v40, %v980_v48 }
 0x1e8   : > { %v1020_v9 = vmax.f32 %v981_v50, 0.0 }
 0x1ea   : > { %1036 = vst [vmem:[%s2109_s30 + $0x20] sm:$0xff] %v1020_v9 }
 0x1f3   : > { %v995_v51 = vpop.f32.mrf.mxu2  ;;  %v1007_v34 = vpop.f32.mrf.mxu3 }
 0x1f4   : > { %v996_v29 = vadd.f32 %v2097_v40, %v995_v51  ;;  %v1008_v8 = vadd.f32 %v2097_v40, %v1007_v34 }
 0x1f6   : > { %v1025_v11 = vmax.f32 %v996_v29, 0.0  ;;  %v1029_v16 = vmax.f32 %v1008_v8, 0.0 }
 0x1f8   : > { %1041 = vst [vmem:[%s2109_s30 + $0x48] sm:$0xff] %v1025_v11 }
 0x1f9   : > { %1045 = vst [vmem:[%s2109_s30 + $0x68] sm:$0xff] %v1029_v16 }
 0x206   : > { %v983_v45 = vpop.f32.mrf.mxu1 }
 0x207   : > { %v984_v53 = vadd.f32 %v2097_v40, %v983_v45 }
 0x209   : > { %v1021_v60 = vmax.f32 %v984_v53, 0.0 }
 0x20b   : > { %1037 = vst [vmem:[%s2109_s30 + $0x28] sm:$0xff] %v1021_v60 }
 0x20d   : > { %v971_v43 = vpop.f32.mrf.mxu0 }
 0x20e   : > { %v972_v0 = vadd.f32 %v2097_v40, %v971_v43 }
 0x210   : > { %v1017_v55 = vmax.f32 %v972_v0, 0.0 }
 0x212   : > { %1033 = vst [vmem:[%s2109_s30 + $0x8] sm:$0xff] %v1017_v55 }
 0x21c   : > { %v998_v31 = vpop.f32.mrf.mxu2 }
 0x21d   : > { %v999_v15 = vadd.f32 %v2097_v40, %v998_v31 }
 0x21f   : > { %v1026_v42 = vmax.f32 %v999_v15, 0.0 }
 0x221   : > { %1042 = vst [vmem:[%s2109_s30 + $0x50] sm:$0xff] %v1026_v42 }
 0x223   : > { %v1010_v1 = vpop.f32.mrf.mxu3 }
 0x224   : > { %v1011_v38 = vadd.f32 %v2097_v40, %v1010_v1 }
 0x226   : > { %v1030_v27 = vmax.f32 %v1011_v38, 0.0 }
 0x228   : > { %1046 = vst [vmem:[%s2109_s30 + $0x70] sm:$0xff] %v1030_v27 }
 0x23d   : > { %v974_v56 = vpop.f32.mrf.mxu0  ;;  %v986_v37 = vpop.f32.mrf.mxu1 }
 0x23e   : > { %v975_v5 = vadd.f32 %v2097_v40, %v974_v56  ;;  %v987_v20 = vadd.f32 %v2097_v40, %v986_v37 }
 0x240   : > { %v1018_v19 = vmax.f32 %v975_v5, 0.0  ;;  %v1022_v18 = vmax.f32 %v987_v20, 0.0 }
 0x242   : > { %1034 = vst [vmem:[%s2109_s30 + $0x10] sm:$0xff] %v1018_v19 }
 0x243   : > { %1038 = vst [vmem:[%s2109_s30 + $0x30] sm:$0xff] %v1022_v18 }
 0x24b   : > { %v1001_v22 = vpop.f32.mrf.mxu2 }
 0x24c   : > { %v1002_v58 = vadd.f32 %v2097_v40, %v1001_v22  ;;  %v1013_v39 = vpop.f32.mrf.mxu3 }
 0x24d   : > { %v1014_v28 = vadd.f32 %v2097_v40, %v1013_v39 }
 0x24e   : > { %v1027_v52 = vmax.f32 %v1002_v58, 0.0 }
 0x24f   : > { %v1031_v6 = vmax.f32 %v1014_v28, 0.0 }
 0x250   : > { %1043 = vst [vmem:[%s2109_s30 + $0x58] sm:$0xff] %v1027_v52 }
 0x251   : > { %1047 = vst [vmem:[%s2109_s30 + $0x78] sm:$0xff] %v1031_v6 }
 0x25d   : > { %v989_v62 = vpop.f32.mrf.mxu1 }
 0x25e   : > { %v977_v7 = vpop.f32.mrf.mxu0  ;;  %v990_v17 = vadd.f32 %v2097_v40, %v989_v62 }
 0x25f   : > { %v978_v33 = vadd.f32 %v2097_v40, %v977_v7 }
 0x260   : > { %v1023_v44 = vmax.f32 %v990_v17, 0.0 }
 0x261   : > { %v1019_v61 = vmax.f32 %v978_v33, 0.0 }
 0x262   : > { %1039 = vst [vmem:[%s2109_s30 + $0x38] sm:$0xff] %v1023_v44 }
 0x263   : > { %1035 = vst [vmem:[%s2109_s30 + $0x18] sm:$0xff] %v1019_v61 }
 0x264 PF: > { %s13_s16 = sadd.s32 1, %s1275_s16   ;;  %s2189_s12 = smov %s1267_s14 }
 0x265   : > { %p10_p7 = scmp.ge.s32.totalorder %s13_s16, 6   ;;  %s2190_s13 = smov %s1271_s15 }
 0x266   : > { %s2191_s14 = smov %s2194_s17  ;;  %s2192_s15 = smov %s2198_s18 }
 0x267   :  { %12 = sbr.rel (!%p10_p7) target bundleno = 3 (0x3), region = 62 }

</bundles_post_ra>
